<compile_context>
chip_gen: v6e
topology: v6e:2x2x1
jax: 0.10.0
libtpu: 0.0.40
codegen_flags: <defaults>
</compile_context>

<pallas_src>
import math

import jax
import jax.numpy as jnp
from jax import lax
from jax.experimental import pallas as pl
from jax.experimental.pallas import tpu as pltpu


# ------------------------------ helpers ------------------------------------

def _pick_tile(dim, prefs):
    """Largest preferred tile that evenly divides `dim`, else the full dim."""
    for p in prefs:
        if dim >= p and dim % p == 0:
            return p
    return dim


def _rope(x, cos, sin):
    """rotate-half RoPE: x*cos + rotate_half(x)*sin (same math as the module).

    For lane-aligned head_dim (>=128) pltpu.roll(x, D//2, -1) * sign would keep
    this on the XLU slot; slice+concat is used here for robustness at small D.
    """
    half = x.shape[-1] // 2
    x1 = x[..., :half]
    x2 = x[..., half:]
    rot = jnp.concatenate([-x2, x1], axis=-1)
    return x * cos + rot * sin


# --------------------------- tiled linear kernel ----------------------------

def _matmul_kernel(x_ref, w_ref, o_ref, acc_ref):
    @pl.when(pl.program_id(2) == 0)
    def _init():
        acc_ref[...] = jnp.zeros(acc_ref.shape, acc_ref.dtype)

    acc_ref[...] += jnp.dot(x_ref[...], w_ref[...],
                            preferred_element_type=jnp.float32)

    @pl.when(pl.program_id(2) == pl.num_programs(2) - 1)
    def _store():
        o_ref[...] = acc_ref[...].astype(o_ref.dtype)


def pallas_linear(x, w_t):
    """y = x @ w_t with w_t already transposed to (in_features, out_features).

    Weight packing/transposition is done once at parameter-prep time, so the
    forward pass never materializes extra HBM copies of the weights."""
    m, k = x.shape
    k2, n = w_t.shape
    assert k == k2

    # 512-class tiles fill the 256x256 MXU on v6e/v7x; on v5e (4x128^2 MXU)
    # they lose nothing and stay well inside the 16 MiB default scoped VMEM.
    tm = _pick_tile(m, (512, 256, 128))
    tn = _pick_tile(n, (512, 256, 128))
    tk = _pick_tile(k, (512, 256, 128))
    grid = (m // tm, n // tn, k // tk)

    return pl.pallas_call(
        _matmul_kernel,
        out_shape=jax.ShapeDtypeStruct((m, n), x.dtype),
        grid=grid,
        in_specs=[
            pl.BlockSpec((tm, tk), lambda i, j, kk: (i, kk)),
            pl.BlockSpec((tk, tn), lambda i, j, kk: (kk, j)),
        ],
        out_specs=pl.BlockSpec((tm, tn), lambda i, j, kk: (i, j)),
        scratch_shapes=[pltpu.VMEM((tm, tn), jnp.float32)],
        compiler_params=pltpu.CompilerParams(
            dimension_semantics=("parallel", "parallel", "arbitrary")),
    )(x, w_t)


# --------------------------- standalone RoPE kernel -------------------------

def _rope_kernel(x_ref, cos_ref, sin_ref, o_ref):
    o_ref[0] = _rope(x_ref[0], cos_ref[...], sin_ref[...])


def pallas_rope(x, cos, sin):
    """Apply rotate-half RoPE once to head-major x: (B*H, S, D); cos/sin: (S, D).

    Used for K only (Hkv heads), so the attention kernel never re-rotates K and
    never streams cos_k/sin_k on its inner axis."""
    bh, s, d = x.shape
    ts = _pick_tile(s, (512, 256, 128))
    dtype = x.dtype
    return pl.pallas_call(
        _rope_kernel,
        out_shape=jax.ShapeDtypeStruct((bh, s, d), dtype),
        grid=(bh, s // ts),
        in_specs=[
            pl.BlockSpec((1, ts, d), lambda h, si: (h, si, 0)),
            pl.BlockSpec((ts, d), lambda h, si: (si, 0)),
            pl.BlockSpec((ts, d), lambda h, si: (si, 0)),
        ],
        out_specs=pl.BlockSpec((1, ts, d), lambda h, si: (h, si, 0)),
        compiler_params=pltpu.CompilerParams(
            dimension_semantics=("parallel", "parallel")),
    )(x, cos.astype(dtype), sin.astype(dtype))


# --------------------------- flash attention kernel -------------------------

def _flash_attn_kernel(q_ref, k_ref, v_ref, cq_ref, sq_ref, o_ref,
                       q_scr, m_scr, l_scr, acc_scr):
    n_rep, tq, d = q_ref.shape
    tkv = k_ref.shape[1]

    qi = pl.program_id(1)
    ki = pl.program_id(2)

    @pl.when(ki == 0)
    def _init():
        # Rotate + pre-scale Q once per q tile (resident across the whole KV
        # axis), packed head-major into one (n_rep*tq, d) scratch so each inner
        # step issues a single batched QK^T and a single batched PV matmul.
        cq = cq_ref[...]
        sq = sq_ref[...]
        for r in range(n_rep):  # static, n_rep small; runs only at ki == 0
            q_scr[pl.ds(r * tq, tq), :] = _rope(q_ref[r], cq, sq)
        m_scr[...] = jnp.full(m_scr.shape, -jnp.inf, dtype=m_scr.dtype)
        l_scr[...] = jnp.zeros(l_scr.shape, l_scr.dtype)
        acc_scr[...] = jnp.zeros(acc_scr.shape, acc_scr.dtype)

    def _update(masked):
        k = k_ref[0]                 # (tkv, d); RoPE already applied (pallas_rope)
        v = v_ref[0]                 # (tkv, d)
        q = q_scr[...]               # (n_rep*tq, d); rotated + scaled
        s = lax.dot_general(q, k, (((1,), (1,)), ((), ())),
                            preferred_element_type=jnp.float32)  # (n_rep*tq, tkv)
        if masked:
            # Only the diagonal KV block needs masking (tq == tkv; blocks with
            # ki < qi are fully below the diagonal). Row r*tq + i corresponds
            # to query position qi*tq + i, so the in-tile token index is row%tq.
            row = lax.broadcasted_iota(jnp.int32, s.shape, 0)
            col = lax.broadcasted_iota(jnp.int32, s.shape, 1)
            s = jnp.where((row % tq) >= col, s, -1e30)  # s stays fp32

        m_prev = m_scr[...]
        m_new = jnp.maximum(m_prev, jnp.max(s, axis=-1, keepdims=True))
        alpha = jnp.exp(m_prev - m_new)
        p = jnp.exp(s - m_new)       # masked entries underflow to exactly 0
        l_scr[...] = alpha * l_scr[...] + jnp.sum(p, axis=-1, keepdims=True)
        acc_scr[...] = alpha * acc_scr[...] + jnp.dot(
            p.astype(v.dtype), v, preferred_element_type=jnp.float32)
        m_scr[...] = m_new

    @pl.when(ki < qi)
    def _below_diagonal():
        _update(masked=False)

    @pl.when(ki == qi)
    def _diagonal():
        _update(masked=True)

    @pl.when(ki == pl.num_programs(2) - 1)
    def _finalize():
        # Finalize runs once per q tile, so an exact reciprocal is essentially
        # free and avoids the ~1e-3 error of the approximate EUP path.
        inv_l = pl.reciprocal(l_scr[...], approx=False)
        acc = acc_scr[...] * inv_l
        for r in range(n_rep):
            o_ref[r] = acc[r * tq:(r + 1) * tq, :].astype(o_ref.dtype)


def pallas_flash_attention(q, k, v, cos, sin, *, n_rep, scale):
    """q: (B*Hq, S, D) head-major; k (RoPE pre-applied), v: (B*Hkv, S, D);
    cos/sin: (S, D) — used only for the in-kernel Q rotation.

    Online-softmax causal attention with fused Q-RoPE/scale and GQA sharing."""
    bhq, s, d = q.shape
    bhkv = k.shape[0]
    assert bhq == bhkv * n_rep

    # 256-class tiles are safe on every generation (v5e 16 MiB default scoped
    # VMEM, v7x 64 MiB physical); bump to 512 on v6e if profiling shows
    # step-overhead dominating. tq == tkv is required by the diagonal-only mask.
    tq = _pick_tile(s, (256, 128))
    tkv = tq
    grid = (bhkv, s // tq, s // tkv)

    dtype = q.dtype
    cos_q = (cos * scale).astype(dtype)   # fold 1/sqrt(D) into the q rotation
    sin_q = (sin * scale).astype(dtype)

    return pl.pallas_call(
        _flash_attn_kernel,
        out_shape=jax.ShapeDtypeStruct((bhq, s, d), dtype),
        grid=grid,
        in_specs=[
            # One KV head owns the n_rep query heads that share it (GQA via
            # BlockSpec; no repeated K/V in HBM).
            pl.BlockSpec((n_rep, tq, d), lambda g, qi, ki: (g, qi, 0)),     # q
            # Clamp the KV block index to the causal diagonal: fully-masked
            # steps re-reference the resident block, so no DMA is issued for
            # the upper triangle (~halves K/V HBM traffic).
            pl.BlockSpec((1, tkv, d),
                         lambda g, qi, ki: (g, jnp.minimum(ki, qi), 0)),    # k
            pl.BlockSpec((1, tkv, d),
                         lambda g, qi, ki: (g, jnp.minimum(ki, qi), 0)),    # v
            pl.BlockSpec((tq, d), lambda g, qi, ki: (qi, 0)),               # cos_q
            pl.BlockSpec((tq, d), lambda g, qi, ki: (qi, 0)),               # sin_q
        ],
        out_specs=pl.BlockSpec((n_rep, tq, d), lambda g, qi, ki: (g, qi, 0)),
        scratch_shapes=[
            pltpu.VMEM((n_rep * tq, d), dtype),        # rotated + scaled Q
            pltpu.VMEM((n_rep * tq, 1), jnp.float32),  # running max
            pltpu.VMEM((n_rep * tq, 1), jnp.float32),  # running denom
            pltpu.VMEM((n_rep * tq, d), jnp.float32),  # output accumulator
        ],
        compiler_params=pltpu.CompilerParams(
            dimension_semantics=("parallel", "parallel", "arbitrary")),
    )(q, k, v, cos_q, sin_q)


# ------------------------------ module wrapper ------------------------------

def prepare_params(raw_params):
    """One-time weight packing: fuse [wq; wk; wv] and pre-transpose to
    (in_features, out_features) so the forward pass does no concat/transpose."""
    w_qkv = jnp.concatenate(
        [raw_params["wq"], raw_params["wk"], raw_params["wv"]], axis=0)
    return {
        "w_qkv_t": jnp.asarray(w_qkv.T),
        "wo_t": jnp.asarray(raw_params["wo"].T),
    }


def grin_flash_attention2_forward(
    hidden_states,
    params,
    *,
    num_heads,
    num_kv_heads,
    head_dim,
    rope_theta=10000.0,
):
    """GRINFlashAttention2.forward with attention_mask=None, past_key_value=None,
    dropout=0 (eval mode). Returns the attention output (attn_weights=None)."""
    bsz, q_len, hidden = hidden_states.shape
    n_rep = num_heads // num_kv_heads

    x2d = hidden_states.reshape(bsz * q_len, hidden)

    # Fused QKV projection: x read from HBM once, one tiled GEMM.
    qkv = pallas_linear(x2d, params["w_qkv_t"])          # (B*S, (Hq+2*Hkv)*D)

    nq = num_heads * head_dim
    nkv = num_kv_heads * head_dim
    q2d = qkv[:, :nq]
    k2d = qkv[:, nq:nq + nkv]
    v2d = qkv[:, nq + nkv:]

    # Head-major layout for the attention kernel: (B*H, S, D).
    def to_heads(x, h):
        return (x.reshape(bsz, q_len, h, head_dim)
                 .transpose(0, 2, 1, 3)
                 .reshape(bsz * h, q_len, head_dim))

    q = to_heads(q2d, num_heads)
    k = to_heads(k2d, num_kv_heads)
    v = to_heads(v2d, num_kv_heads)

    # Rotary tables (rotate-half convention).
    inv_freq = 1.0 / (rope_theta ** (jnp.arange(0, head_dim, 2, dtype=jnp.float32) / head_dim))
    t = jnp.arange(q_len, dtype=jnp.float32)
    freqs = jnp.outer(t, inv_freq)                        # (S, D/2)
    emb = jnp.concatenate([freqs, freqs], axis=-1)        # (S, D)
    cos = jnp.cos(emb)
    sin = jnp.sin(emb)

    # K is rotated exactly once (cheap: only Hkv heads); Q rotation + the
    # 1/sqrt(D) scale are fused into the attention kernel itself.
    k = pallas_rope(k, cos, sin)

    scale = 1.0 / math.sqrt(head_dim)
    attn = pallas_flash_attention(q, k, v, cos, sin, n_rep=n_rep, scale=scale)

    attn = (attn.reshape(bsz, num_heads, q_len, head_dim)
                .transpose(0, 2, 1, 3)
                .reshape(bsz * q_len, num_heads * head_dim))
    out = pallas_linear(attn, params["wo_t"]).reshape(bsz, q_len, hidden)
    return out


# ----------------------------- pure-JAX reference ----------------------------

def _reference_forward(hidden_states, raw_params, *, num_heads, num_kv_heads,
                       head_dim, rope_theta):
    bsz, q_len, hidden = hidden_states.shape
    n_rep = num_heads // num_kv_heads
    x2d = hidden_states.reshape(bsz * q_len, hidden)
    q = (x2d @ raw_params["wq"].T).reshape(bsz, q_len, num_heads, head_dim)
    k = (x2d @ raw_params["wk"].T).reshape(bsz, q_len, num_kv_heads, head_dim)
    v = (x2d @ raw_params["wv"].T).reshape(bsz, q_len, num_kv_heads, head_dim)

    inv_freq = 1.0 / (rope_theta ** (jnp.arange(0, head_dim, 2, dtype=jnp.float32) / head_dim))
    t = jnp.arange(q_len, dtype=jnp.float32)
    emb = jnp.concatenate([jnp.outer(t, inv_freq)] * 2, axis=-1)
    cos = jnp.cos(emb)[None, :, None, :]
    sin = jnp.sin(emb)[None, :, None, :]

    def rope(x):
        half = head_dim // 2
        rot = jnp.concatenate([-x[..., half:], x[..., :half]], axis=-1)
        return x * cos + rot * sin

    q, k = rope(q), rope(k)
    k = jnp.repeat(k, n_rep, axis=2)
    v = jnp.repeat(v, n_rep, axis=2)
    q, k, v = (a.transpose(0, 2, 1, 3) for a in (q, k, v))     # (B, H, S, D)
    scores = jnp.einsum("bhqd,bhkd->bhqk", q, k) / math.sqrt(head_dim)
    causal = jnp.tril(jnp.ones((q_len, q_len), dtype=bool))
    scores = jnp.where(causal[None, None], scores, -jnp.inf)
    probs = jax.nn.softmax(scores, axis=-1)
    attn = jnp.einsum("bhqk,bhkd->bhqd", probs, v)
    attn = attn.transpose(0, 2, 1, 3).reshape(bsz * q_len, num_heads * head_dim)
    return (attn @ raw_params["wo"].T).reshape(bsz, q_len, hidden)


# ----------------------------------- main ------------------------------------

if __name__ == "__main__":
    batch, seq = 2, 8
    hidden = 32
    num_heads = 4
    num_kv_heads = 2
    head_dim = hidden // num_heads  # 8
    rope_theta = 10000.0

    key = jax.random.PRNGKey(0)
    k_x, k_q, k_k, k_v, k_o = jax.random.split(key, 5)

    hidden_states = jax.random.normal(k_x, (batch, seq, hidden), dtype=jnp.float32)

    # torch nn.Linear weight layout: (out_features, in_features); bias=False.
    raw_params = {
        "wq": 0.1 * jax.random.normal(k_q, (num_heads * head_dim, hidden), jnp.float32),
        "wk": 0.1 * jax.random.normal(k_k, (num_kv_heads * head_dim, hidden), jnp.float32),
        "wv": 0.1 * jax.random.normal(k_v, (num_kv_heads * head_dim, hidden), jnp.float32),
        "wo": 0.1 * jax.random.normal(k_o, (hidden, num_heads * head_dim), jnp.float32),
    }
    params = prepare_params(raw_params)   # once, outside the forward pass

    out = grin_flash_attention2_forward(
        hidden_states,
        params,
        num_heads=num_heads,
        num_kv_heads=num_kv_heads,
        head_dim=head_dim,
        rope_theta=rope_theta,
    )
    jax.block_until_ready(out)
    assert out.shape == (batch, seq, hidden)

    ref = _reference_forward(
        hidden_states, raw_params,
        num_heads=num_heads, num_kv_heads=num_kv_heads,
        head_dim=head_dim, rope_theta=rope_theta)
    if not bool(jnp.allclose(out, ref, atol=5e-3, rtol=5e-3)):
        raise AssertionError(
            f"mismatch vs reference: max_err={float(jnp.max(jnp.abs(out - ref)))}")

    print("KERNEL_OK")
</pallas_src>

<mosaic_0001>
module attributes {stable_mosaic.version = 11 : i64} {
  func.func @_matmul_kernel(%arg0: i32, %arg1: i32, %arg2: i32, %arg3: memref<16x32xf32, #tpu.memory_space<vmem>>, %arg4: memref<32x64xf32, #tpu.memory_space<vmem>>, %arg5: memref<16x64xf32, #tpu.memory_space<vmem>>, %arg6: memref<16x64xf32, #tpu.memory_space<vmem>>) attributes {dimension_semantics = [#tpu.dimension_semantics<parallel>, #tpu.dimension_semantics<parallel>, #tpu.dimension_semantics<arbitrary>], iteration_bounds = array<i64: 1, 1, 1>, scalar_prefetch = 0 : i64, scratch_operands = 1 : i64, tpu.core_type = #tpu.core_type<tc>, window_params = [{transform_indices = @transform_0, window_bounds = array<i64: 16, 32>}, {transform_indices = @transform_1, window_bounds = array<i64: 32, 64>}, {transform_indices = @transform_2, window_bounds = array<i64: 16, 64>}]} {
    %c0_i32 = arith.constant 0 : i32
    %0 = arith.cmpi eq, %arg2, %c0_i32 : i32
    %1 = arith.extui %0 : i1 to i32
    %c0_i32_0 = arith.constant 0 : i32
    %2 = arith.cmpi ne, %1, %c0_i32_0 : i32
    scf.if %2 {
      %cst_10 = arith.constant 0.000000e+00 : f32
      %12 = vector.broadcast %cst_10 : f32 to vector<16x64xf32>
      %c0_11 = arith.constant 0 : index
      %c0_12 = arith.constant 0 : index
      %13 = vector.load %arg6[%c0_11, %c0_12] : memref<16x64xf32, #tpu.memory_space<vmem>>, vector<16x64xf32>
      tpu.vector_store %arg6[%c0_11, %c0_12], %12 {strides = array<i32>} : memref<16x64xf32, #tpu.memory_space<vmem>>, vector<16x64xf32>,
    } else {
    }
    %c0 = arith.constant 0 : index
    %c0_1 = arith.constant 0 : index
    %3 = vector.load %arg6[%c0, %c0_1] : memref<16x64xf32, #tpu.memory_space<vmem>>, vector<16x64xf32>
    %c0_2 = arith.constant 0 : index
    %c0_3 = arith.constant 0 : index
    %4 = vector.load %arg3[%c0_2, %c0_3] : memref<16x32xf32, #tpu.memory_space<vmem>>, vector<16x32xf32>
    %c0_4 = arith.constant 0 : index
    %c0_5 = arith.constant 0 : index
    %5 = vector.load %arg4[%c0_4, %c0_5] : memref<32x64xf32, #tpu.memory_space<vmem>>, vector<32x64xf32>
    %cst = arith.constant dense<0.000000e+00> : vector<16x64xf32>
    %6 = tpu.matmul %4, %5, %cst {dimension_numbers = #tpu.dot_dimension_numbers<[1], [0], [0], [1], [0, 0, 1, 1], [], []>} : vector<16x32xf32>, vector<32x64xf32>, vector<16x64xf32> -> vector<16x64xf32>
    %7 = arith.addf %3, %6 : vector<16x64xf32>
    %c0_6 = arith.constant 0 : index
    %c0_7 = arith.constant 0 : index
    %8 = vector.load %arg6[%c0_6, %c0_7] : memref<16x64xf32, #tpu.memory_space<vmem>>, vector<16x64xf32>
    tpu.vector_store %arg6[%c0_6, %c0_7], %7 {strides = array<i32>} : memref<16x64xf32, #tpu.memory_space<vmem>>, vector<16x64xf32>,
    %c0_i32_8 = arith.constant 0 : i32
    %9 = arith.cmpi eq, %arg2, %c0_i32_8 : i32
    %10 = arith.extui %9 : i1 to i32
    %c0_i32_9 = arith.constant 0 : i32
    %11 = arith.cmpi ne, %10, %c0_i32_9 : i32
    scf.if %11 {
      %c0_10 = arith.constant 0 : index
      %c0_11 = arith.constant 0 : index
      %12 = vector.load %arg6[%c0_10, %c0_11] : memref<16x64xf32, #tpu.memory_space<vmem>>, vector<16x64xf32>
      %c0_12 = arith.constant 0 : index
      %c0_13 = arith.constant 0 : index
      %13 = vector.load %arg5[%c0_12, %c0_13] : memref<16x64xf32, #tpu.memory_space<vmem>>, vector<16x64xf32>
      tpu.vector_store %arg5[%c0_12, %c0_13], %12 {strides = array<i32>} : memref<16x64xf32, #tpu.memory_space<vmem>>, vector<16x64xf32>,
    } else {
    }
    return
  }
  func.func @transform_0(%arg0: i32, %arg1: i32, %arg2: i32) -> (i32, i32) {
    %c0_i32 = arith.constant 0 : i32
    return %arg0, %arg2 : i32, i32
  }
  func.func @transform_1(%arg0: i32, %arg1: i32, %arg2: i32) -> (i32, i32) {
    %c0_i32 = arith.constant 0 : i32
    return %arg2, %arg1 : i32, i32
  }
  func.func @transform_2(%arg0: i32, %arg1: i32, %arg2: i32) -> (i32, i32) {
    %c0_i32 = arith.constant 0 : i32
    return %arg0, %arg1 : i32, i32
  }
}

</mosaic_0001>

<bundles_post_ra>
// kernel: tpu_custom_call.1
= control target key start
LH: loop header
LB: loop body
LE: loop exit
PB: predicated region body
PF: predicated region fallthrough
CT: control target
= control target key end

     0   :  { %7 = vsyncpa [#allocation4], 0  ;;  %s305_s0 = inlined_call_operand.hbm [shape: f32[16,32], index: 0, kind: input, shape index: {}]   ;;  %s306_s1 = inlined_call_operand.hbm [shape: f32[32,64], index: 1, kind: input, shape index: {}]   ;;  %s307_s2 = inlined_call_operand.hbm [shape: f32[16,64], index: 2, kind: output, shape index: {}]  }
   0x1   :  { %8 = vsyncpa [#allocation7], 0 }
   0x2   :  { %9 = vsyncpa [#allocation5], 0  ;;  %s258_s9 = smov [#allocation3]  }
   0x3   :  { %s15_s10 = sshll.u32 %s258_s9, 4  ;;  %s16_s10 = int_to_ptr.vmem [resolvable:$true] %s15_s10 }
   0x4   :  { %s200_s11 = scalar_lea.vmem %s16_s10, 256  ;;  %p205_p1 = scmp.lt.s32.totalorder %s16_s10, %s16_s10 }
   0x5   :  { %p201_p0 = scmp.ne.s32.totalorder %s16_s10, %s200_s11  ;;  %p206_p2 = scmp.lt.s32.totalorder %s200_s11, %s200_s11 }
   0x7   :  { %p207_p3 = por %p206_p2, %p205_p1 }
   0x9   :  { %p208_p4 = pnand %p207_p3, %p201_p0 }
   0xb   :  { %211 = shalt.err (!%p208_p4)
}
   0xc   :  { %s259_s12 = smov 128   ;;  %s260_s13 = smov 8  }
   0xd   :  { %21 = dma.hbm_to_vmem [thread:$0]  %s305_s0, 256, %s16_s10, [#allocation4], %s259_s12, %s259_s12, %s260_s13  }
   0xe   :  { %s261_s16 = smov [#allocation6]  }
   0xf   :  { %s27_s17 = sshll.u32 %s261_s16, 4  ;;  %s28_s17 = int_to_ptr.vmem [resolvable:$true] %s27_s17 }
  0x10   :  { %s220_s18 = scalar_lea.vmem %s28_s17, 512  ;;  %p225_p6 = scmp.lt.s32.totalorder %s28_s17, %s28_s17 }
  0x11   :  { %p221_p5 = scmp.ne.s32.totalorder %s28_s17, %s220_s18  ;;  %p226_p7 = scmp.lt.s32.totalorder %s220_s18, %s220_s18 }
  0x13   :  { %p227_p8 = por %p226_p7, %p225_p6 }
  0x15   :  { %p228_p9 = pnand %p227_p8, %p221_p5 }
  0x17   :  { %231 = shalt.err (!%p228_p9)
}
  0x18   :  { %33 = dma.hbm_to_vmem [thread:$0]  %s306_s1, 512, %s28_s17, [#allocation7], %s259_s12, %s259_s12, %s260_s13  }
  0x19   :  { %252 = dma.done.wait [#allocation4], 256  }
  0x1a   :  { %253 = vsyncadd [#allocation4], 4294967040 }
  0x1b   :  { %254 = dma.done.wait [#allocation7], 512  }
  0x1c   :  { %255 = vsyncadd [#allocation7], 4294966784  ;;  %vm44_vm0 = vcmask 523264   ;;  %v262_v0 = vmov 0.0   ;;  %vm55_vm1 = vcmask 261120   ;;  %v54_v1 = vld [vmem:[#allocation6 + $0x18] sm:$0xff] }
  0x1d   :  { %46 = vst.msk [vmem:[#allocation2 + $0x8] sm:$0xff] %vm44_vm0, %v262_v0  ;;  %45 = vst.msk [vmem:[#allocation2] sm:$0xff] %vm44_vm0, %v262_v0  ;;  %v53_v2 = vld [vmem:[#allocation6 + $0x10] sm:$0xff]  ;;  %175 = vmatprep.subr.mxu0 %v54_v1  ;;  %v52_v4 = vld [vmem:[#allocation6 + $0x8] sm:$0xff]  ;;  %s263_s0 = smov [#allocation8]  }
  0x1e   :  { %v49_v3 = vld [vmem:[#allocation3] sm:$0xff]  ;;  %176 = vmatpush3.msra.mxu0 %v54_v1  ;;  %v51_v5 = vld [vmem:[#allocation6] sm:$0xff]  ;;  %v50_v6 = vld [vmem:[#allocation3 + $0x8] sm:$0xff]  ;;  %s154_s1 = sshll.u32 %s263_s0, 4  ;;  %s155_s1 = int_to_ptr.vmem [resolvable:$true] %s154_s1 }
  0x1f   :  { %183 = vmatprep.mubr.msk.f32.mxu0 %vm55_vm1, %v49_v3  ;;  %177 = vmatprep.subr.mxu0 %v53_v2  ;;  %s232_s21 = scalar_lea.vmem %s155_s1, 256  ;;  %p237_p11 = scmp.lt.s32.totalorder %s155_s1, %s155_s1 }
  0x20   :  { %178 = vmatpush3.msra.mxu0 %v53_v2  ;;  %p233_p10 = scmp.ne.s32.totalorder %s155_s1, %s232_s21  ;;  %p238_p12 = scmp.lt.s32.totalorder %s232_s21, %s232_s21 }
  0x21   :  { %179 = vmatprep.subr.mxu0 %v52_v4 }
  0x22   :  { %180 = vmatpush3.msra.mxu0 %v52_v4  ;;  %p239_p13 = por %p238_p12, %p237_p11 }
  0x23   :  { %181 = vmatprep.subr.mxu0 %v51_v5 }
  0x24   :  { %182 = vmatpush3.msra.mxu0 %v51_v5  ;;  %v48_v7 = vld [vmem:[#allocation2 + $0x8] sm:$0xff]  ;;  %v47_v9 = vld [vmem:[#allocation2] sm:$0xff]  ;;  %p240_p0 = pnand %p239_p13, %p233_p10 }
  0x25   :  { %184 = vmatmul.mubr.msk.f32.vlgmr.msra.gmra.mxu0 %vm55_vm1, %v50_v6 }
  0xe5   :  { %v185_v8 = vpop.f32.mrf.mxu0 }
  0xe6   :  { %v138_v10 = vadd.f32 %v185_v8, %v48_v7 }
  0xe7   :  { %v128_v11 = vpop.f32.mrf.mxu0 }
  0xe8   :  { %141 = vst.msk [vmem:[#allocation2 + $0x8] sm:$0xff] %vm44_vm0, %v138_v10  ;;  %v137_v12 = vadd.f32 %v128_v11, %v47_v9 }
  0xea   :  { %140 = vst.msk [vmem:[#allocation2] sm:$0xff] %vm44_vm0, %v137_v12 }
  0xef   :  { %v146_v13 = vld [vmem:[#allocation2 + $0x8] sm:$0xff] }
  0xf0   :  { %148 = vst.msk [vmem:[#allocation8 + $0x8] sm:$0xff] %vm44_vm0, %v146_v13 }
  0xf1   :  { %v145_v14 = vld [vmem:[#allocation2] sm:$0xff] }
  0xf2   :  { %147 = vst.msk [vmem:[#allocation8] sm:$0xff] %vm44_vm0, %v145_v14 }
  0xf3   :  { %243 = shalt.err (!%p240_p0)
}
  0xf4   :  { %160 = dma.vmem_to_hbm [thread:$0]  %s155_s1, 256, %s307_s2, [#allocation5], %s259_s12, %s259_s12, %s260_s13  }
  0xf5   :  { %256 = dma.done.wait [#allocation5], 256  }
  0xf6   :  { %257 = vsyncadd [#allocation5], 4294967040 }
  0xf7   :  { %164 = vsyncpa [#allocation4], 1 }
  0xf8   :  { %165 = vsyncpa [#allocation7], 1 }
  0xf9   :  { %166 = vsyncpa [#allocation5], 1 }

</bundles_post_ra>
